<compile_context>
chip_gen: v7x
topology: tpu7x:2x2x1
jax: 0.10.0
libtpu: 0.0.40
codegen_flags: <defaults>
</compile_context>

<pallas_src>
import math

import jax
import jax.numpy as jnp
from jax.experimental import pallas as pl
from jax.experimental.pallas import tpu as pltpu


def _round_up(x, m):
    return ((x + m - 1) // m) * m


def qvalue_kernel(mx_ref, ma_ref, w1s_ref, w1a_ref, b1_ref,
                  w2_ref, b2_ref, w3_ref, b3_ref, o_ref):
    # fc1: split matmul replaces torch.cat([mx, ma], dim=1).  Everything is
    # feature-major, so each layer is a plain (out, in) @ (in, TB) matmul.
    h1 = (jnp.dot(w1s_ref[...], mx_ref[...], preferred_element_type=jnp.float32)
          + jnp.dot(w1a_ref[...], ma_ref[...], preferred_element_type=jnp.float32)
          + b1_ref[...])                                    # (H, TB) f32
    h1 = jnp.maximum(h1, 0.0).astype(jnp.bfloat16)

    # fc2 + ReLU
    h2 = jnp.dot(w2_ref[...], h1, preferred_element_type=jnp.float32) + b2_ref[...]
    h2 = jnp.maximum(h2, 0.0).astype(jnp.bfloat16)          # (H, TB)

    # fc_out: (1, H) @ (H, TB) -> (1, TB).  Batch sits on the 128-lane axis,
    # so the store is lane-dense and no transpose of h2 is needed.
    q = jnp.dot(w3_ref[...], h2, preferred_element_type=jnp.float32)
    o_ref[...] = q + b3_ref[...]                            # b3 (1, 1) broadcasts


def qvalue_forward(mx, ma, params, *, tile_b=1024):
    """Pallas implementation of QvalueNet.forward.

    mx: (B, *state_dims)  -> flattened to (B, state_dim)
    ma: (B, *action_dims) -> flattened to (B, action_dim)
    Returns (B, 1) float32.
    """
    B = mx.shape[0]
    # Flatten, cast to bf16 once, and go feature-major (features on sublanes,
    # batch on lanes).  Under jit the cast / transpose / pad fuse.
    mx2 = mx.reshape(B, -1).astype(jnp.bfloat16).T          # (S, B)
    ma2 = ma.reshape(B, -1).astype(jnp.bfloat16).T          # (A, B)
    S, A = mx2.shape[0], ma2.shape[0]

    w1s, w1a, b1 = params["w1s"], params["w1a"], params["b1"]
    w2, b2 = params["w2"], params["b2"]
    w3, b3 = params["w3"], params["b3"]
    H = w2.shape[0]

    # Pad the batch only up to the next multiple of 128 (lane-dense output).
    B_pad = _round_up(B, 128)
    if B_pad != B:
        mx2 = jnp.pad(mx2, ((0, 0), (0, B_pad - B)))
        ma2 = jnp.pad(ma2, ((0, 0), (0, B_pad - B)))

    # Keep batch tiles large (each grid step costs ~0.35 us), but split into
    # >=2 tiles when possible so the v7x megacore can shard the batch axis.
    tb = min(_round_up(tile_b, 128), B_pad)
    if tb == B_pad and B_pad >= 1024:
        tb = _round_up(B_pad // 2, 128)
    num_tiles = pl.cdiv(B_pad, tb)                          # tail tile masked

    const = lambda i: (0, 0)   # weights/biases: resident, fetched once
    col = lambda i: (0, i)     # activation / output tiles over the batch

    flops = 2 * B_pad * ((S + A) * H + H * H + H)
    w_bytes = ((S + A) * H + H * H + H) * 2 + (2 * H + 2) * 4
    bytes_accessed = B_pad * (S + A) * 2 + w_bytes + B_pad * 4

    # Scoped-VMEM request: double-buffered activation/output tiles, resident
    # weights (default double-buffered), h1/h2 intermediates, plus headroom.
    vmem_est = (2 * tb * (S + A) * 2      # input tiles (bf16, 2 buffers)
                + 2 * tb * 4              # (1, tb) f32 output row (2 buffers)
                + 2 * w_bytes             # weights / biases
                + 12 * tb * H)            # h1/h2 f32 + bf16 live copies
    vmem_limit = min(64 << 20, max(int(1.5 * vmem_est), 32 << 20))

    out = pl.pallas_call(
        qvalue_kernel,
        grid=(num_tiles,),
        in_specs=[
            pl.BlockSpec((S, tb), col),     # mx^T tile (bf16)
            pl.BlockSpec((A, tb), col),     # ma^T tile (bf16)
            pl.BlockSpec((H, S), const),    # fc1 weight, state columns
            pl.BlockSpec((H, A), const),    # fc1 weight, action columns
            pl.BlockSpec((H, 1), const),    # fc1 bias
            pl.BlockSpec((H, H), const),    # fc2 weight
            pl.BlockSpec((H, 1), const),    # fc2 bias
            pl.BlockSpec((1, H), const),    # fc_out weight
            pl.BlockSpec((1, 1), const),    # fc_out bias
        ],
        out_specs=pl.BlockSpec((1, tb), col),
        out_shape=jax.ShapeDtypeStruct((1, B_pad), jnp.float32),
        compiler_params=pltpu.CompilerParams(
            dimension_semantics=("parallel",),
            vmem_limit_bytes=vmem_limit),
        cost_estimate=pl.CostEstimate(flops=flops, transcendentals=0,
                                      bytes_accessed=bytes_accessed),
    )(mx2, ma2, w1s, w1a, b1, w2, b2, w3, b3)

    return out[0, :B].reshape(B, 1)


def init_params(key, state_dim, hidden_dim, action_dim):
    """Matches the PyTorch module's init statistics.

    All three weights use kaiming_uniform_; with nonlinearity='relu'
    (fc1, fc2) and the default call (leaky_relu, a=0) for fc_out the gain is
    sqrt(2) in every case -> bound = sqrt(6 / fan_in).  Biases keep
    nn.Linear's default uniform(-1/sqrt(fan_in), 1/sqrt(fan_in)).
    Weights are stored in PyTorch (out_features, in_features) layout, bf16;
    biases are stored as (out_features, 1) f32 columns for the feature-major
    kernel.
    """
    in_dim = state_dim + action_dim
    ks = jax.random.split(key, 6)

    def kaiming_uniform(k, fan_in, shape):
        bound = math.sqrt(6.0 / fan_in)
        return jax.random.uniform(k, shape, jnp.float32, -bound, bound)

    def bias_uniform(k, fan_in, shape):
        bound = 1.0 / math.sqrt(fan_in)
        return jax.random.uniform(k, shape, jnp.float32, -bound, bound)

    w1 = kaiming_uniform(ks[0], in_dim, (hidden_dim, in_dim))       # (H, S+A)
    return {
        "w1s": w1[:, :state_dim].astype(jnp.bfloat16),              # (H, S)
        "w1a": w1[:, state_dim:].astype(jnp.bfloat16),              # (H, A)
        "b1": bias_uniform(ks[1], in_dim, (hidden_dim, 1)),
        "w2": kaiming_uniform(ks[2], hidden_dim,
                              (hidden_dim, hidden_dim)).astype(jnp.bfloat16),
        "b2": bias_uniform(ks[3], hidden_dim, (hidden_dim, 1)),
        "w3": kaiming_uniform(ks[4], hidden_dim,
                              (1, hidden_dim)).astype(jnp.bfloat16),
        "b3": bias_uniform(ks[5], hidden_dim, (1, 1)),
    }


def reference_forward(mx, ma, params):
    """Pure-JAX reference with identical bf16-input / f32-accumulate math."""
    B = mx.shape[0]
    xs = mx.reshape(B, -1).astype(jnp.bfloat16)
    xa = ma.reshape(B, -1).astype(jnp.bfloat16)
    h1 = jnp.maximum(
        jnp.dot(xs, params["w1s"].T, preferred_element_type=jnp.float32)
        + jnp.dot(xa, params["w1a"].T, preferred_element_type=jnp.float32)
        + params["b1"].T, 0.0)
    h2 = jnp.maximum(
        jnp.dot(h1.astype(jnp.bfloat16), params["w2"].T,
                preferred_element_type=jnp.float32) + params["b2"].T, 0.0)
    q = jnp.dot(h2.astype(jnp.bfloat16), params["w3"].T,
                preferred_element_type=jnp.float32) + params["b3"]
    return q


if __name__ == "__main__":
    # Small, deterministic example shapes consistent with the module:
    #   multi_state_dim=16, multi_action_dim=8, multi_hidden_dim=32, batch=4.
    # mx is given as (B, 4, 4) to exercise the .view(B, -1) flatten.
    B, STATE_DIM, ACTION_DIM, HIDDEN = 4, 16, 8, 32

    key = jax.random.PRNGKey(0)
    k_mx, k_ma, k_params = jax.random.split(key, 3)

    mx = jax.random.normal(k_mx, (B, 4, 4), jnp.float32)
    ma = jax.random.normal(k_ma, (B, ACTION_DIM), jnp.float32)
    params = init_params(k_params, STATE_DIM, HIDDEN, ACTION_DIM)

    qvalue_jit = jax.jit(qvalue_forward)
    out = jax.block_until_ready(qvalue_jit(mx, ma, params))

    ref = reference_forward(mx, ma, params)
    assert out.shape == (B, 1)
    assert jnp.allclose(out, ref, atol=5e-3, rtol=5e-3)

    print("KERNEL_OK")
</pallas_src>

<mosaic_0001>
module attributes {stable_mosaic.version = 11 : i64} {
  func.func @qvalue_kernel(%arg0: i32, %arg1: memref<16x128xbf16, #tpu.memory_space<vmem>>, %arg2: memref<8x128xbf16, #tpu.memory_space<vmem>>, %arg3: memref<32x16xbf16, #tpu.memory_space<vmem>>, %arg4: memref<32x8xbf16, #tpu.memory_space<vmem>>, %arg5: memref<32x1xf32, #tpu.memory_space<vmem>>, %arg6: memref<32x32xbf16, #tpu.memory_space<vmem>>, %arg7: memref<32x1xf32, #tpu.memory_space<vmem>>, %arg8: memref<1x32xbf16, #tpu.memory_space<vmem>>, %arg9: memref<1x1xf32, #tpu.memory_space<vmem>>, %arg10: memref<1x128xf32, #tpu.memory_space<vmem>>) attributes {dimension_semantics = [#tpu.dimension_semantics<parallel>], iteration_bounds = array<i64: 1>, scalar_prefetch = 0 : i64, scratch_operands = 0 : i64, tpu.core_type = #tpu.core_type<tc>, window_params = [{transform_indices = @transform_0, window_bounds = array<i64: 16, 128>}, {transform_indices = @transform_1, window_bounds = array<i64: 8, 128>}, {pipeline_mode = #tpu.pipeline_mode<synchronous>, transform_indices = @transform_2, window_bounds = array<i64: 32, 16>}, {pipeline_mode = #tpu.pipeline_mode<synchronous>, transform_indices = @transform_3, window_bounds = array<i64: 32, 8>}, {pipeline_mode = #tpu.pipeline_mode<synchronous>, transform_indices = @transform_4, window_bounds = array<i64: 32, 1>}, {pipeline_mode = #tpu.pipeline_mode<synchronous>, transform_indices = @transform_5, window_bounds = array<i64: 32, 32>}, {pipeline_mode = #tpu.pipeline_mode<synchronous>, transform_indices = @transform_6, window_bounds = array<i64: 32, 1>}, {pipeline_mode = #tpu.pipeline_mode<synchronous>, transform_indices = @transform_7, window_bounds = array<i64: 1, 32>}, {pipeline_mode = #tpu.pipeline_mode<synchronous>, transform_indices = @transform_8, window_bounds = array<i64: 1, 1>}, {transform_indices = @transform_9, window_bounds = array<i64: 1, 128>}]} {
    %c0 = arith.constant 0 : index
    %c0_0 = arith.constant 0 : index
    %0 = vector.load %arg3[%c0, %c0_0] : memref<32x16xbf16, #tpu.memory_space<vmem>>, vector<32x16xbf16>
    %c0_1 = arith.constant 0 : index
    %c0_2 = arith.constant 0 : index
    %1 = vector.load %arg1[%c0_1, %c0_2] : memref<16x128xbf16, #tpu.memory_space<vmem>>, vector<16x128xbf16>
    %cst = arith.constant dense<0.000000e+00> : vector<32x128xf32>
    %2 = tpu.matmul %0, %1, %cst {dimension_numbers = #tpu.dot_dimension_numbers<[1], [0], [0], [1], [0, 0, 1, 1], [], []>} : vector<32x16xbf16>, vector<16x128xbf16>, vector<32x128xf32> -> vector<32x128xf32>
    %c0_3 = arith.constant 0 : index
    %c0_4 = arith.constant 0 : index
    %3 = vector.load %arg4[%c0_3, %c0_4] : memref<32x8xbf16, #tpu.memory_space<vmem>>, vector<32x8xbf16>
    %c0_5 = arith.constant 0 : index
    %c0_6 = arith.constant 0 : index
    %4 = vector.load %arg2[%c0_5, %c0_6] : memref<8x128xbf16, #tpu.memory_space<vmem>>, vector<8x128xbf16>
    %cst_7 = arith.constant dense<0.000000e+00> : vector<32x128xf32>
    %5 = tpu.matmul %3, %4, %cst_7 {dimension_numbers = #tpu.dot_dimension_numbers<[1], [0], [0], [1], [0, 0, 1, 1], [], []>} : vector<32x8xbf16>, vector<8x128xbf16>, vector<32x128xf32> -> vector<32x128xf32>
    %6 = arith.addf %2, %5 : vector<32x128xf32>
    %c0_8 = arith.constant 0 : index
    %c0_9 = arith.constant 0 : index
    %7 = vector.load %arg5[%c0_8, %c0_9] : memref<32x1xf32, #tpu.memory_space<vmem>>, vector<32x1xf32>
    %8 = vector.broadcast %7 : vector<32x1xf32> to vector<32x128xf32>
    %9 = arith.addf %6, %8 : vector<32x128xf32>
    %cst_10 = arith.constant 0.000000e+00 : f32
    %10 = vector.broadcast %cst_10 : f32 to vector<32x128xf32>
    %11 = arith.maximumf %9, %10 : vector<32x128xf32>
    %12 = arith.truncf %11 : vector<32x128xf32> to vector<32x128xbf16>
    %c0_11 = arith.constant 0 : index
    %c0_12 = arith.constant 0 : index
    %13 = vector.load %arg6[%c0_11, %c0_12] : memref<32x32xbf16, #tpu.memory_space<vmem>>, vector<32x32xbf16>
    %cst_13 = arith.constant dense<0.000000e+00> : vector<32x128xf32>
    %14 = tpu.matmul %13, %12, %cst_13 {dimension_numbers = #tpu.dot_dimension_numbers<[1], [0], [0], [1], [0, 0, 1, 1], [], []>} : vector<32x32xbf16>, vector<32x128xbf16>, vector<32x128xf32> -> vector<32x128xf32>
    %c0_14 = arith.constant 0 : index
    %c0_15 = arith.constant 0 : index
    %15 = vector.load %arg7[%c0_14, %c0_15] : memref<32x1xf32, #tpu.memory_space<vmem>>, vector<32x1xf32>
    %16 = vector.broadcast %15 : vector<32x1xf32> to vector<32x128xf32>
    %17 = arith.addf %14, %16 : vector<32x128xf32>
    %cst_16 = arith.constant 0.000000e+00 : f32
    %18 = vector.broadcast %cst_16 : f32 to vector<32x128xf32>
    %19 = arith.maximumf %17, %18 : vector<32x128xf32>
    %20 = arith.truncf %19 : vector<32x128xf32> to vector<32x128xbf16>
    %c0_17 = arith.constant 0 : index
    %c0_18 = arith.constant 0 : index
    %21 = vector.load %arg8[%c0_17, %c0_18] : memref<1x32xbf16, #tpu.memory_space<vmem>>, vector<1x32xbf16>
    %cst_19 = arith.constant dense<0.000000e+00> : vector<1x128xf32>
    %22 = tpu.matmul %21, %20, %cst_19 {dimension_numbers = #tpu.dot_dimension_numbers<[1], [0], [0], [1], [0, 0, 1, 1], [], []>} : vector<1x32xbf16>, vector<32x128xbf16>, vector<1x128xf32> -> vector<1x128xf32>
    %c0_20 = arith.constant 0 : index
    %c0_21 = arith.constant 0 : index
    %23 = vector.load %arg9[%c0_20, %c0_21] : memref<1x1xf32, #tpu.memory_space<vmem>>, vector<1x1xf32>
    %24 = vector.broadcast %23 : vector<1x1xf32> to vector<1x128xf32>
    %25 = arith.addf %22, %24 : vector<1x128xf32>
    %c0_22 = arith.constant 0 : index
    %c0_23 = arith.constant 0 : index
    %26 = vector.load %arg10[%c0_22, %c0_23] : memref<1x128xf32, #tpu.memory_space<vmem>>, vector<1x128xf32>
    tpu.vector_store %arg10[%c0_22, %c0_23], %25 {strides = array<i32>} : memref<1x128xf32, #tpu.memory_space<vmem>>, vector<1x128xf32>,
    return
  }
  func.func @transform_0(%arg0: i32) -> (i32, i32) {
    %c0_i32 = arith.constant 0 : i32
    %c0_i32_0 = arith.constant 0 : i32
    return %c0_i32, %arg0 : i32, i32
  }
  func.func @transform_1(%arg0: i32) -> (i32, i32) {
    %c0_i32 = arith.constant 0 : i32
    %c0_i32_0 = arith.constant 0 : i32
    return %c0_i32, %arg0 : i32, i32
  }
  func.func @transform_2(%arg0: i32) -> (i32, i32) {
    %c0_i32 = arith.constant 0 : i32
    %c0_i32_0 = arith.constant 0 : i32
    %c0_i32_1 = arith.constant 0 : i32
    return %c0_i32, %c0_i32_0 : i32, i32
  }
  func.func @transform_3(%arg0: i32) -> (i32, i32) {
    %c0_i32 = arith.constant 0 : i32
    %c0_i32_0 = arith.constant 0 : i32
    %c0_i32_1 = arith.constant 0 : i32
    return %c0_i32, %c0_i32_0 : i32, i32
  }
  func.func @transform_4(%arg0: i32) -> (i32, i32) {
    %c0_i32 = arith.constant 0 : i32
    %c0_i32_0 = arith.constant 0 : i32
    %c0_i32_1 = arith.constant 0 : i32
    return %c0_i32, %c0_i32_0 : i32, i32
  }
  func.func @transform_5(%arg0: i32) -> (i32, i32) {
    %c0_i32 = arith.constant 0 : i32
    %c0_i32_0 = arith.constant 0 : i32
    %c0_i32_1 = arith.constant 0 : i32
    return %c0_i32, %c0_i32_0 : i32, i32
  }
  func.func @transform_6(%arg0: i32) -> (i32, i32) {
    %c0_i32 = arith.constant 0 : i32
    %c0_i32_0 = arith.constant 0 : i32
    %c0_i32_1 = arith.constant 0 : i32
    return %c0_i32, %c0_i32_0 : i32, i32
  }
  func.func @transform_7(%arg0: i32) -> (i32, i32) {
    %c0_i32 = arith.constant 0 : i32
    %c0_i32_0 = arith.constant 0 : i32
    %c0_i32_1 = arith.constant 0 : i32
    return %c0_i32, %c0_i32_0 : i32, i32
  }
  func.func @transform_8(%arg0: i32) -> (i32, i32) {
    %c0_i32 = arith.constant 0 : i32
    %c0_i32_0 = arith.constant 0 : i32
    %c0_i32_1 = arith.constant 0 : i32
    return %c0_i32, %c0_i32_0 : i32, i32
  }
  func.func @transform_9(%arg0: i32) -> (i32, i32) {
    %c0_i32 = arith.constant 0 : i32
    %c0_i32_0 = arith.constant 0 : i32
    return %c0_i32, %arg0 : i32, i32
  }
}

</mosaic_0001>

<bundles_post_ra>
// kernel: qvalue_forward.1
= control target key start
LH: loop header
LB: loop body
LE: loop exit
PB: predicated region body
PF: predicated region fallthrough
CT: control target
= control target key end

     0   :  { %vm63_vm0 = vcmask 1043456   ;;  %vm56_vm1 = vcmask 64512   ;;  %v453_v1 = vmov 0   ;;  %vm132_vm2 = vcmask 130048   ;;  %s570_s1 = inlined_call_operand.vmem [shape: bf16[8,128], index: 1, kind: input, shape index: {}]   ;;  %s571_s3 = inlined_call_operand.vmem [shape: bf16[32,8], index: 3, kind: input, shape index: {}]   ;;  %s572_s8 = inlined_call_operand.<no memory space> [shape: f32[1,1], index: 8, kind: input, shape index: {}]   ;;  %s573_s0 = inlined_call_operand.vmem [shape: bf16[16,128], index: 0, kind: input, shape index: {}]   ;;  %s574_s2 = inlined_call_operand.vmem [shape: bf16[32,16], index: 2, kind: input, shape index: {}]   ;;  %s575_s4 = inlined_call_operand.vmem [shape: f32[32,1], index: 4, kind: input, shape index: {}]   ;;  %s576_s6 = inlined_call_operand.vmem [shape: f32[32,1], index: 6, kind: input, shape index: {}]   ;;  %s577_s5 = inlined_call_operand.vmem [shape: bf16[32,32], index: 5, kind: input, shape index: {}]   ;;  %s578_s7 = inlined_call_operand.vmem [shape: bf16[1,32], index: 7, kind: input, shape index: {}]   ;;  %s579_s9 = inlined_call_operand.vmem [shape: f32[1,128], index: 9, kind: output, shape index: {}]  }
   0x1   :  { %v45_v0 = vld [vmem:[%s570_s1] sm:$0xf]  ;;  %444 = vset.pattern.permute.xlu0 %v453_v1  ;;  %445 = vset.pattern.permute.xlu1 %v453_v1  ;;  %v14_v2 = vstv %s572_s8  ;;  %v447_v5 = vld [vmem:[%s571_s3 + $0x8] sm:$0xff]   ;;  %v190_v9 = vld [vmem:[%s575_s4 + $0x10] sm:$0xff]  ;;  %vm260_vm3 = vcmask 261120   ;;  %v454_v38 = vmov 0.0   ;;  %v329_v58 = vlaneseq }
   0x2   :  { %440 = vmatprep.subr.msk.bf16.mxu0 %vm63_vm0, %v45_v0  ;;  %v65_v3 = vsel %vm63_vm0, %v45_v0, 0  ;;  %v446_v4 = vld [vmem:[%s571_s3] sm:$0xff]   ;;  %15 = vst [vmem:[#allocation2] sm:$0x1] %v14_v2  ;;  %204 = vperm.xlu1 %445, %v190_v9   ;;  %v189_v10 = vld [vmem:[%s575_s4 + $0x8] sm:$0xff]  ;;  %v191_v11 = vld [vmem:[%s575_s4 + $0x18] sm:$0xff] }
   0x3   :  { %409 = vmatpush3.bf16.msra.mxu0 %v65_v3  ;;  %410 = vmatprep.mubr.msk.bf16.mxu0 %vm56_vm1, %v446_v4  ;;  %v448_v6 = vld [vmem:[%s573_s0] sm:$0xff]   ;;  %v227_v13 = vld [vmem:[%s576_s6 + $0x8] sm:$0xff]  ;;  %v228_v15 = vld [vmem:[%s576_s6 + $0x10] sm:$0xff]  ;;  %vm455_vm4 = vmmov 0   ;;  %v330_v59 = vshrl.u32 %v329_v58, 7 }
   0x4   :  { %v449_v7 = vld [vmem:[%s574_s2] sm:$0xff]   ;;  %414 = vmatprep.subr.bf16.mxu0 %v448_v6  ;;  %v450_v14 = vld [vmem:[%s574_s2 + $0x8] sm:$0xff]   ;;  %v229_v16 = vld [vmem:[%s576_s6 + $0x18] sm:$0xff] }
   0x5   :  { %v188_v8 = vld [vmem:[%s575_s4] sm:$0xff]  ;;  %v452_v37 = vld [vmem:[%s577_s5 + $0x8] sm:$0xff]   ;;  %v331_v60 = vsub.s32 0, %v330_v59 }
   0x6   :  { %411 = vmatmul.mubr.msk.bf16.vlgmr.msra.gmra.mrb[0].mxu0 %vm56_vm1, %v447_v5  ;;  %194 = vperm.xlu0 %444, %v188_v8   ;;  %v226_v12 = vld [vmem:[%s576_s6] sm:$0xff] }
   0x7   :  { %415 = vmatpush3.bf16.msra.mxu0 %v448_v6  ;;  %416 = vmatprep.mubr.msk.bf16.mxu0 %vm132_vm2, %v449_v7  ;;  %v451_v18 = vld [vmem:[%s577_s5] sm:$0xff]  }
   0x8   :  { %209 = vperm.xlu1 %445, %v191_v11   ;;  %424 = vmatprep.mubr.msk.bf16.mxu1 %vm260_vm3, %v451_v18  ;;  %v322_v57 = vld [vmem:[%s578_s7] sm:$0x1] }
   0x9   :  { %v323_v17 = vld [vmem:[#allocation2] sm:$0x1] }
   0xa   :  { %199 = vperm.xlu0 %444, %v189_v10  }
   0xc   :  { %237 = vperm.xlu1 %445, %v227_v13  }
   0xe   :  { %232 = vperm.xlu0 %444, %v226_v12  }
  0x10   :  { %247 = vperm.xlu1 %445, %v229_v16  }
  0x12   :  { %417 = vmatmul.mubr.msk.bf16.vlgmr.msra.gmra.mrb[0].mxu0 %vm132_vm2, %v450_v14  ;;  %242 = vperm.xlu0 %444, %v228_v15  }
  0x16   :  { %326 = vperm.xlu0 %444, %v323_v17  }
  0x81   :  { %v205_v19 = vpop.permute.xlu1 %204 }
  0x85   :  { %v195_v20 = vpop.permute.xlu0 %194 }
  0x87   :  { %v210_v24 = vpop.permute.xlu1 %209 }
  0x89   :  { %v200_v27 = vpop.permute.xlu0 %199 }
  0x8b   :  { %v238_v40 = vpop.permute.xlu1 %237 }
  0x8d   :  { %v233_v39 = vpop.permute.xlu0 %232 }
  0x8f   :  { %v248_v45 = vpop.permute.xlu1 %247 }
  0x91   :  { %v243_v41 = vpop.permute.xlu0 %242 }
  0x95   :  { %v327_v61 = vpop.permute.xlu0 %326 }
  0x96   :  { %v332_v62 = vrot.slane %v327_v61, %v331_v60 }
  0xe5   :  { %v418_v21 = vpop.f32.mrb[0].mxu0 }
  0xe6   :  { %v214_v22 = vadd.f32 %v418_v21, %v205_v19  ;;  %v173_v23 = vpop.f32.mrb[1].mxu0 }
  0xe7   :  { %v212_v25 = vadd.f32 %v195_v20, %v173_v23  ;;  %v419_v26 = vpop.f32.mrb[2].mxu0 }
  0xe8   :  { %v215_v28 = vadd.f32 %v419_v26, %v210_v24  ;;  %v176_v29 = vpop.f32.mrb[3].mxu0  ;;  %v218_v31 = vmax.f32 %v214_v22, 0.0 }
  0xe9   :  { %v213_v30 = vadd.f32 %v200_v27, %v176_v29  ;;  %v216_v33 = vmax.f32 %v212_v25, 0.0 }
  0xea   :  { %v219_v32 = vmax.f32 %v215_v28, 0.0 }
  0xeb   :  { %v217_v34 = vmax.f32 %v213_v30, 0.0 }
  0xec   :  { %v221_v35 = vpack.c.bf16 %v219_v32, %v218_v31 }
  0xed   :  { %v220_v36 = vpack.c.bf16 %v217_v34, %v216_v33 }
  0xef   :  { %420 = vmatprep.subr.bf16.mxu1 %v220_v36 }
  0xf0   :  { %421 = vmatpush3.bf16.msra.mxu1 %v220_v36 }
  0xf1   :  { %422 = vmatprep.subr.bf16.mxu1 %v221_v35 }
  0xf4   :  { %423 = vmatpush3.bf16.msra.mxu1 %v221_v35 }
  0xf5   :  { %428 = vmatprep.subr.bf16.mxu1 %v454_v38 }
  0xf7   :  { %425 = vmatmul.mubr.msk.bf16.vlgmr.msra.gmra.mrb[0].mxu1 %vm260_vm3, %v452_v37 }
  0xf8   :  { %432 = vmatprep.mubr.msk.bf16.mxu1 %vm455_vm4, %v454_v38 }
 0x1ca   :  { %v426_v42 = vpop.f32.mrb[0].mxu1 }
 0x1cb   :  { %v310_v43 = vadd.f32 %v426_v42, %v243_v41  ;;  %v301_v44 = vpop.f32.mrb[1].mxu1 }
 0x1cc   :  { %v302_v46 = vadd.f32 %v301_v44, %v233_v39  ;;  %v427_v47 = vpop.f32.mrb[2].mxu1 }
 0x1cd   :  { %v313_v48 = vadd.f32 %v427_v47, %v248_v45  ;;  %v304_v49 = vpop.f32.mrb[3].mxu1  ;;  %v318_v51 = vmax.f32 %v310_v43, 0.0 }
 0x1ce   :  { %v305_v50 = vadd.f32 %v304_v49, %v238_v40  ;;  %v316_v53 = vmax.f32 %v302_v46, 0.0 }
 0x1cf   :  { %v319_v52 = vmax.f32 %v313_v48, 0.0 }
 0x1d0   :  { %v317_v54 = vmax.f32 %v305_v50, 0.0 }
 0x1d1   :  { %v321_v55 = vpack.c.bf16 %v319_v52, %v318_v51 }
 0x1d2   :  { %v320_v56 = vpack.c.bf16 %v317_v54, %v316_v53 }
 0x1d4   :  { %429 = vmatpush3.bf16.msra.mxu1 %v320_v56 }
 0x1d5   :  { %430 = vmatprep.subr.bf16.mxu1 %v454_v38 }
 0x1d8   :  { %431 = vmatpush3.bf16.msra.mxu1 %v321_v55 }
 0x1db   :  { %433 = vmatmul.mubr.msk.bf16.vlgmr.msra.gmra.mrb[4].mxu1 %vm260_vm3, %v322_v57 }
 0x2ae   :  { %v370_v63 = vpop.f32.mrb[4].mxu1 }
 0x2af   :  { %v371_v0 = vadd.f32 %v370_v63, %v332_v62  ;;  %v434_v1 = vpop.f32.mrb[5].mxu1 }
 0x2b0   :  { %v373_v2 = vpop.f32.mrb[6].mxu1 }
 0x2b1   :  { %376 = vst [vmem:[%s579_s9] sm:$0x1] %v371_v0  ;;  %v435_v3 = vpop.f32.mrb[7].mxu1 }

</bundles_post_ra>
